<compile_context>
chip_gen: v7x
topology: tpu7x:2x2x1
jax: 0.10.0
libtpu: 0.0.40
codegen_flags: <defaults>
</compile_context>

<pallas_src>
import functools
import math

import jax
import jax.numpy as jnp
from jax import lax
from jax.experimental import pallas as pl
from jax.experimental.pallas import tpu as pltpu


# ---------------------------------------------------------------------------
# Parameter / buffer construction (glue, plain JAX) -- mirrors __init__
# ---------------------------------------------------------------------------
def make_positional_encoding(d_model: int, max_len: int = 5000,
                             dtype=jnp.float32) -> jnp.ndarray:
    position = jnp.arange(max_len, dtype=jnp.float32)[:, None]            # [max_len, 1]
    div_term = jnp.exp(
        jnp.arange(0, d_model, 2, dtype=jnp.float32) * (-math.log(10000.0) / d_model)
    )                                                                     # [d_model//2]
    pe = jnp.zeros((max_len, 1, d_model), dtype=jnp.float32)
    pe = pe.at[:, 0, 0::2].set(jnp.sin(position * div_term))
    pe = pe.at[:, 0, 1::2].set(jnp.cos(position * div_term))              # even d_model (as in PyTorch)
    return pe.astype(dtype)                                               # [max_len, 1, d_model]


# ---------------------------------------------------------------------------
# Pallas kernel: x + pe[:S]  then (inverted) dropout
# ---------------------------------------------------------------------------
def _pe_dropout_kernel(seed_ref, x_ref, pe_ref, o_ref, *, p: float, training: bool):
    # x_ref : [TS, B, D] VMEM, pe_ref : [TS, 1, D] VMEM (broadcast over batch)
    y = x_ref[...] + pe_ref[...]

    if training and p > 0.0:
        ts, b, d = x_ref.shape
        # Stateless counter-based PRNG: hash(global element index, seed).
        # Only plain 32-bit integer VPU ops -> lowers on TPU and in interpret
        # mode.  The global row index includes program_id, so every grid tile
        # gets an independent dropout mask.
        row = lax.broadcasted_iota(jnp.int32, (ts, b, d), 0)
        cb = lax.broadcasted_iota(jnp.int32, (ts, b, d), 1)
        cd = lax.broadcasted_iota(jnp.int32, (ts, b, d), 2)
        row_off = pl.program_id(0) * ts                                   # int32 scalar
        idx = ((row + row_off) * (b * d) + cb * d + cd).astype(jnp.uint32)

        seed_u = seed_ref[0].astype(jnp.uint32)
        bits = idx + seed_u * jnp.uint32(0x9E3779B9)
        # lowbias32 integer finalizer
        bits = bits ^ (bits >> jnp.uint32(16))
        bits = bits * jnp.uint32(0x7FEB352D)
        bits = bits ^ (bits >> jnp.uint32(15))
        bits = bits * jnp.uint32(0x846CA68B)
        bits = bits ^ (bits >> jnp.uint32(16))

        # Integer-threshold keep mask (no float conversion): P(drop) ~= p.
        thresh = jnp.uint32(min(int(round(p * (2 ** 32))), 2 ** 32 - 1))
        keep = bits >= thresh
        scale = jnp.asarray(1.0 / (1.0 - p), dtype=y.dtype)
        y = jnp.where(keep, y * scale, jnp.zeros((), dtype=y.dtype))

    o_ref[...] = y.astype(o_ref.dtype)


def positional_encoding_forward(
    x: jnp.ndarray,          # [S, B, D]
    pe: jnp.ndarray,         # [max_len, 1, D]
    *,
    p: float = 0.2,
    training: bool = True,
    seed: int = 0,
    tile_bytes: int = 2 * 1024 * 1024,   # ~2 MiB x-tile -> safe on v5e/v6e/v7x VMEM
) -> jnp.ndarray:
    S, B, D = x.shape
    pe_slice = pe[:S].astype(x.dtype)    # cheap glue; keeps add/select in x.dtype
    seed_arr = jnp.array([seed], dtype=jnp.int32)

    # Sequence-axis tile size so double-buffered (x, out) + pe tiles stay well
    # inside the scoped VMEM limit on every generation.
    bytes_per_row = B * D * x.dtype.itemsize
    ts = max(1, min(S, tile_bytes // max(1, bytes_per_row)))
    if ts >= 8:
        ts = (ts // 8) * 8
    grid = (pl.cdiv(S, ts),)

    kernel = functools.partial(_pe_dropout_kernel, p=float(p), training=bool(training))

    return pl.pallas_call(
        kernel,
        out_shape=jax.ShapeDtypeStruct((S, B, D), x.dtype),
        grid=grid,
        in_specs=[
            pl.BlockSpec(memory_space=pltpu.MemorySpace.SMEM),            # seed scalar
            pl.BlockSpec((ts, B, D), lambda i: (i, 0, 0)),                # x tile
            pl.BlockSpec((ts, 1, D), lambda i: (i, 0, 0)),                # pe tile (bcast over B in-kernel)
        ],
        out_specs=pl.BlockSpec((ts, B, D), lambda i: (i, 0, 0)),
        compiler_params=pltpu.CompilerParams(
            dimension_semantics=("parallel",),                            # megacore sharding on v7x
        ),
    )(seed_arr, x, pe_slice)


# ---------------------------------------------------------------------------
# Demo / smoke test
# ---------------------------------------------------------------------------
if __name__ == "__main__":
    d_model = 128        # lane-dense last dim (multiple of 128)
    seq_len = 8
    batch = 2
    max_len = 64
    p_drop = 0.2         # module-level `dropout = 0.2`

    key = jax.random.PRNGKey(0)
    x = jax.random.normal(key, (seq_len, batch, d_model), dtype=jnp.float32)
    pe = make_positional_encoding(d_model, max_len)

    # Eval-mode path (dropout == identity): check against pure-JAX reference.
    out_eval = positional_encoding_forward(x, pe, p=p_drop, training=False)
    out_eval = jax.block_until_ready(out_eval)
    ref = x + pe[:seq_len]
    assert jnp.allclose(out_eval, ref, atol=1e-6), "eval-mode mismatch"

    # Training-mode path: every element must be 0 (dropped) or (x+pe)/(1-p).
    out_train = positional_encoding_forward(x, pe, p=p_drop, training=True, seed=123)
    out_train = jax.block_until_ready(out_train)
    assert out_train.shape == (seq_len, batch, d_model)
    scaled = ref / (1.0 - p_drop)
    ok = jnp.isclose(out_train, 0.0, atol=1e-6) | jnp.isclose(
        out_train, scaled, atol=1e-5, rtol=1e-5
    )
    assert bool(jnp.all(ok)), "training-mode dropout structure mismatch"

    print("KERNEL_OK")
</pallas_src>

<mosaic_0001>
module attributes {stable_mosaic.version = 11 : i64} {
  func.func @_pe_dropout_kernel(%arg0: i32, %arg1: memref<1xi32, #tpu.memory_space<smem>>, %arg2: memref<8x2x128xf32, #tpu.memory_space<vmem>>, %arg3: memref<8x1x128xf32, #tpu.memory_space<vmem>>, %arg4: memref<8x2x128xf32, #tpu.memory_space<vmem>>) attributes {dimension_semantics = [#tpu.dimension_semantics<parallel>], iteration_bounds = array<i64: 1>, scalar_prefetch = 0 : i64, scratch_operands = 0 : i64, tpu.core_type = #tpu.core_type<tc>, window_params = [{transform_indices = @transform_0, window_bounds = array<i64: 1>}, {transform_indices = @transform_1, window_bounds = array<i64: 8, 2, 128>}, {transform_indices = @transform_2, window_bounds = array<i64: 8, 1, 128>}, {transform_indices = @transform_3, window_bounds = array<i64: 8, 2, 128>}]} {
    %c0 = arith.constant 0 : index
    %c0_0 = arith.constant 0 : index
    %c0_1 = arith.constant 0 : index
    %0 = vector.load %arg2[%c0, %c0_0, %c0_1] : memref<8x2x128xf32, #tpu.memory_space<vmem>>, vector<8x2x128xf32>
    %c0_2 = arith.constant 0 : index
    %c0_3 = arith.constant 0 : index
    %c0_4 = arith.constant 0 : index
    %1 = vector.load %arg3[%c0_2, %c0_3, %c0_4] : memref<8x1x128xf32, #tpu.memory_space<vmem>>, vector<8x1x128xf32>
    %2 = vector.broadcast %1 : vector<8x1x128xf32> to vector<8x2x128xf32>
    %3 = arith.addf %0, %2 : vector<8x2x128xf32>
    %c0_5 = arith.constant 0 : index
    %c0_6 = arith.constant 0 : index
    %c0_7 = arith.constant 0 : index
    %4 = vector.load %arg4[%c0_5, %c0_6, %c0_7] : memref<8x2x128xf32, #tpu.memory_space<vmem>>, vector<8x2x128xf32>
    tpu.vector_store %arg4[%c0_5, %c0_6, %c0_7], %3 {strides = array<i32>} : memref<8x2x128xf32, #tpu.memory_space<vmem>>, vector<8x2x128xf32>,
    return
  }
  func.func @transform_0(%arg0: i32) -> i32 {
    %c0_i32 = arith.constant 0 : i32
    %c0_i32_0 = arith.constant 0 : i32
    return %c0_i32 : i32
  }
  func.func @transform_1(%arg0: i32) -> (i32, i32, i32) {
    %c0_i32 = arith.constant 0 : i32
    %c0_i32_0 = arith.constant 0 : i32
    %c0_i32_1 = arith.constant 0 : i32
    return %arg0, %c0_i32, %c0_i32_0 : i32, i32, i32
  }
  func.func @transform_2(%arg0: i32) -> (i32, i32, i32) {
    %c0_i32 = arith.constant 0 : i32
    %c0_i32_0 = arith.constant 0 : i32
    %c0_i32_1 = arith.constant 0 : i32
    return %arg0, %c0_i32, %c0_i32_0 : i32, i32, i32
  }
  func.func @transform_3(%arg0: i32) -> (i32, i32, i32) {
    %c0_i32 = arith.constant 0 : i32
    %c0_i32_0 = arith.constant 0 : i32
    %c0_i32_1 = arith.constant 0 : i32
    return %arg0, %c0_i32, %c0_i32_0 : i32, i32, i32
  }
}

</mosaic_0001>

<bundles_post_ra>
// kernel: tpu_custom_call.1
= control target key start
LH: loop header
LB: loop body
LE: loop exit
PB: predicated region body
PF: predicated region fallthrough
CT: control target
= control target key end

     0   :  { %9 = vsyncpa [#allocation4], 0  ;;  %s301_s0 = inlined_call_operand.<no memory space> [shape: s32[1], index: 0, kind: input, shape index: {}]   ;;  %s302_s1 = inlined_call_operand.hbm [shape: f32[8,2,128], index: 1, kind: input, shape index: {}]   ;;  %s303_s2 = inlined_call_operand.hbm [shape: f32[8,1,128], index: 2, kind: input, shape index: {}]   ;;  %s304_s3 = inlined_call_operand.hbm [shape: f32[8,2,128], index: 3, kind: output, shape index: {}]  }
   0x1   :  { %10 = vsyncpa [#allocation7], 0 }
   0x2   :  { %11 = vsyncpa [#allocation5], 0  ;;  %s229_s12 = smov [#allocation3]   ;;  %s157_s16 = scalar_lea.hbm %s302_s1, 256 }
   0x3   :  { %s19_s13 = sshll.u32 %s229_s12, 4  ;;  %p158_p0 = scmp.ne.s32.totalorder %s302_s1, %s157_s16  ;;  %s20_s13 = int_to_ptr.vmem [resolvable:$true] %s19_s13 }
   0x4   :  { %p161_p1 = scmp.lt.u32.totalorder %s157_s16, %s302_s1 }
   0x6   :  { %p163_p2 = pnand %p161_p1, %p158_p0 }
   0x8   :  { %166 = shalt.err (!%p163_p2)
}
   0x9   :  { %s167_s20 = scalar_lea.vmem %s20_s13, 256  ;;  %p172_p4 = scmp.lt.s32.totalorder %s20_s13, %s20_s13 }
   0xa   :  { %p168_p3 = scmp.ne.s32.totalorder %s20_s13, %s167_s20  ;;  %p173_p5 = scmp.lt.s32.totalorder %s167_s20, %s167_s20 }
   0xc   :  { %p174_p6 = por %p173_p5, %p172_p4 }
   0xe   :  { %p175_p7 = pnand %p174_p6, %p168_p3 }
  0x10   :  { %178 = shalt.err (!%p175_p7)
}
  0x11   :  { %s230_s21 = smov 32   ;;  %s231_s22 = smov 2  }
  0x12   :  { %25 = dma.hbm_to_vmem [thread:$0]  %s302_s1, 256, %s20_s13, [#allocation4], %s230_s21, %s230_s21, %s231_s22  }
  0x13   :  { %s232_s25 = smov [#allocation6]   ;;  %s179_s29 = scalar_lea.hbm %s303_s2, 128 }
  0x14   :  { %s31_s26 = sshll.u32 %s232_s25, 4  ;;  %p180_p8 = scmp.ne.s32.totalorder %s303_s2, %s179_s29  ;;  %s32_s26 = int_to_ptr.vmem [resolvable:$true] %s31_s26 }
  0x15   :  { %p183_p9 = scmp.lt.u32.totalorder %s179_s29, %s303_s2 }
  0x17   :  { %p185_p10 = pnand %p183_p9, %p180_p8 }
  0x19   :  { %188 = shalt.err (!%p185_p10)
}
  0x1a   :  { %s189_s7 = scalar_lea.vmem %s32_s26, 128  ;;  %p194_p12 = scmp.lt.s32.totalorder %s32_s26, %s32_s26 }
  0x1b   :  { %p190_p11 = scmp.ne.s32.totalorder %s32_s26, %s189_s7  ;;  %p195_p13 = scmp.lt.s32.totalorder %s189_s7, %s189_s7 }
  0x1d   :  { %p196_p0 = por %p195_p13, %p194_p12 }
  0x1f   :  { %p197_p1 = pnand %p196_p0, %p190_p11 }
  0x21   :  { %200 = shalt.err (!%p197_p1)
}
  0x22   :  { %s233_s1 = smov 16   ;;  %s234_s8 = smov 1  }
  0x23   :  { %37 = dma.hbm_to_vmem [thread:$0]  %s303_s2, 128, %s32_s26, [#allocation7], %s233_s1, %s233_s1, %s234_s8  }
  0x24   :  { %223 = dma.done.wait [#allocation4], 256  }
  0x25   :  { %224 = vsyncadd [#allocation4], 4294967040 }
  0x26   :  { %225 = dma.done.wait [#allocation7], 128  }
  0x27   :  { %226 = vsyncadd [#allocation7], 4294967168  ;;  %s235_s11 = smov [#allocation8]   ;;  %v44_v0 = vld [vmem:[#allocation3] sm:$0x3] }
  0x28   :  { %s283_s12 = sshll.u32 %s235_s11, 4  ;;  %v142_v1 = vld [vmem:[#allocation6] ss:$0 sm:$0xff]  ;;  %v45_v2 = vld [vmem:[#allocation3 + $0x2] sm:$0x3]  ;;  %s130_s12 = int_to_ptr.vmem [resolvable:$true] %s283_s12 }
  0x29   :  { %v108_v3 = vadd.f32 %v142_v1, %v44_v0  ;;  %v143_v4 = vld [vmem:[#allocation6 + $0x1] ss:$0 sm:$0xff]  ;;  %v46_v5 = vld [vmem:[#allocation3 + $0x4] sm:$0x3]  ;;  %v144_v6 = vld [vmem:[#allocation6 + $0x2] ss:$0 sm:$0xff]  ;;  %p206_p3 = scmp.lt.s32.totalorder %s130_s12, %s130_s12 }
  0x2a   :  { %v109_v7 = vadd.f32 %v143_v4, %v45_v2  ;;  %v110_v8 = vadd.f32 %v144_v6, %v46_v5  ;;  %v47_v9 = vld [vmem:[#allocation3 + $0x6] sm:$0x3]  ;;  %v145_v10 = vld [vmem:[#allocation6 + $0x3] ss:$0 sm:$0xff]  ;;  %v48_v11 = vld [vmem:[#allocation3 + $0x8] sm:$0x3] }
  0x2b   :  { %116 = vst [vmem:[#allocation8] sm:$0x3] %v108_v3  ;;  %v111_v12 = vadd.f32 %v145_v10, %v47_v9  ;;  %v146_v13 = vld [vmem:[#allocation6 + $0x4] ss:$0 sm:$0xff]  ;;  %v49_v14 = vld [vmem:[#allocation3 + $0xa] sm:$0x3] }
  0x2c   :  { %v147_v15 = vld [vmem:[#allocation6 + $0x5] ss:$0 sm:$0xff]  ;;  %117 = vst [vmem:[#allocation8 + $0x2] sm:$0x3] %v109_v7  ;;  %118 = vst [vmem:[#allocation8 + $0x4] sm:$0x3] %v110_v8  ;;  %v112_v16 = vadd.f32 %v146_v13, %v48_v11 }
  0x2d   :  { %v113_v17 = vadd.f32 %v147_v15, %v49_v14  ;;  %v50_v18 = vld [vmem:[#allocation3 + $0xc] sm:$0x3]  ;;  %v148_v19 = vld [vmem:[#allocation6 + $0x6] ss:$0 sm:$0xff]  ;;  %v51_v20 = vld [vmem:[#allocation3 + $0xe] sm:$0x3] }
  0x2e   :  { %119 = vst [vmem:[#allocation8 + $0x6] sm:$0x3] %v111_v12  ;;  %v114_v21 = vadd.f32 %v148_v19, %v50_v18  ;;  %v149_v22 = vld [vmem:[#allocation6 + $0x7] ss:$0 sm:$0xff]  ;;  %120 = vst [vmem:[#allocation8 + $0x8] sm:$0x3] %v112_v16 }
  0x2f   :  { %121 = vst [vmem:[#allocation8 + $0xa] sm:$0x3] %v113_v17  ;;  %v115_v23 = vadd.f32 %v149_v22, %v51_v20  ;;  %s201_s2 = scalar_lea.vmem %s130_s12, 256 }
  0x30   :  { %122 = vst [vmem:[#allocation8 + $0xc] sm:$0x3] %v114_v21  ;;  %p202_p2 = scmp.ne.s32.totalorder %s130_s12, %s201_s2  ;;  %p207_p4 = scmp.lt.s32.totalorder %s201_s2, %s201_s2 }
  0x31   :  { %123 = vst [vmem:[#allocation8 + $0xe] sm:$0x3] %v115_v23 }
  0x32   :  { %p208_p5 = por %p207_p4, %p206_p3 }
  0x34   :  { %p209_p6 = pnand %p208_p5, %p202_p2 }
  0x36   :  { %212 = shalt.err (!%p209_p6)
}
  0x37   :  { %s213_s15 = scalar_lea.hbm %s304_s3, 256 }
  0x38   :  { %p214_p7 = scmp.ne.s32.totalorder %s304_s3, %s213_s15  ;;  %p217_p8 = scmp.lt.u32.totalorder %s213_s15, %s304_s3 }
  0x3a   :  { %p219_p9 = pnand %p217_p8, %p214_p7 }
  0x3c   :  { %222 = shalt.err (!%p219_p9)
}
  0x3d   :  { %135 = dma.vmem_to_hbm [thread:$0]  %s130_s12, 256, %s304_s3, [#allocation5], %s230_s21, %s230_s21, %s231_s22  }
  0x3e   :  { %227 = dma.done.wait [#allocation5], 256  }
  0x3f   :  { %228 = vsyncadd [#allocation5], 4294967040 }
  0x40   :  { %139 = vsyncpa [#allocation4], 1 }
  0x41   :  { %140 = vsyncpa [#allocation7], 1 }
  0x42   :  { %141 = vsyncpa [#allocation5], 1 }

</bundles_post_ra>
